<compile_context>
chip_gen: v7x
topology: tpu7x:2x2x1
jax: 0.10.0
libtpu: 0.0.40
codegen_flags: <defaults>
</compile_context>

<pallas_src>
import jax
import jax.numpy as jnp
from jax.experimental import pallas as pl
from jax.experimental.pallas import tpu as pltpu

BN_EPS = 1e-5
LANE = 128
MAX_TN = 2048                 # widest output tile we bother with
VMEM_TILE_BUDGET = 40 << 20   # v7x-safe working-set budget for tile selection


def _round_up(x, m):
    return ((x + m - 1) // m) * m


def _decoder_kernel(x_ref, gamma_ref, beta_ref, w_ref, b_ref, o_ref):
    # BatchNorm1d (training mode) folded to one per-feature FMA.  Recomputed
    # per grid step (cheap: B rows) so the tile axis stays fully parallel.
    x = x_ref[...].astype(jnp.float32)                      # (B, D_in)
    mean = jnp.mean(x, axis=0, keepdims=True)               # (1, D_in)
    centered = x - mean
    var = jnp.mean(centered * centered, axis=0, keepdims=True)   # biased var
    inv_std = jax.lax.rsqrt(var + BN_EPS)
    scale = gamma_ref[...] * inv_std                        # gamma / std
    shift = beta_ref[...] - mean * scale                    # fold mean + beta
    x_bn = (x * scale + shift).astype(w_ref.dtype)          # MXU lhs dtype

    # Linear tile: (B, D_in) @ (D_in, tn) on the MXU, f32 accumulation.
    y = jnp.dot(x_bn, w_ref[...], preferred_element_type=jnp.float32)
    o_ref[...] = (y + b_ref[...]).astype(o_ref.dtype)


def _pick_tn(B, d_in_p, d_out_p, w_isz, max_tn):
    """Largest lane-aligned divisor of d_out_p fitting the VMEM budget."""
    m = d_out_p // LANE
    cands = sorted((k * LANE for k in range(1, m + 1) if m % k == 0),
                   reverse=True)
    cap = max(int(max_tn), LANE)
    fixed = 2 * B * d_in_p * 4 + 4 * d_in_p * 4          # resident x + gamma/beta
    for tn in cands:
        if tn > min(cap, MAX_TN):
            continue
        per_tile = 2 * d_in_p * tn * w_isz + 2 * tn * 4 + 2 * B * tn * 4
        if fixed + per_tile <= VMEM_TILE_BUDGET:
            return tn
    return LANE


def prepare_decoder_params(gamma, beta, w_t, b, *, weight_dtype=jnp.bfloat16):
    """One-time param prep: zero-pad to lane-dense shapes and cast the weight.

    gamma/beta: (1, D_in); w_t: (D_in, D_out); b: (1, D_out).
    Padded features (x=0, gamma=0, beta=0) normalize to exactly 0, and padded
    weight rows/cols are 0, so real output columns are unaffected.
    """
    D_in, D_out = w_t.shape
    d_in_p = _round_up(D_in, LANE)
    d_out_p = _round_up(D_out, LANE)
    return {
        "gamma": jnp.pad(gamma.astype(jnp.float32), ((0, 0), (0, d_in_p - D_in))),
        "beta": jnp.pad(beta.astype(jnp.float32), ((0, 0), (0, d_in_p - D_in))),
        "w": jnp.pad(w_t, ((0, d_in_p - D_in), (0, d_out_p - D_out))).astype(weight_dtype),
        "b": jnp.pad(b.astype(jnp.float32), ((0, 0), (0, d_out_p - D_out))),
        "d_in": D_in, "d_out": D_out,
        "d_in_p": d_in_p, "d_out_p": d_out_p,
        "weight_dtype": jnp.dtype(weight_dtype),
    }


def decoder_forward(x, params, *, max_tn=MAX_TN):
    """x: (B, D_in) float. Returns (B, D_out) float32."""
    B, D_in = x.shape
    assert D_in == params["d_in"], (D_in, params["d_in"])
    D_out = params["d_out"]
    d_in_p, d_out_p = params["d_in_p"], params["d_out_p"]
    w_isz = params["weight_dtype"].itemsize

    tn = _pick_tn(B, d_in_p, d_out_p, w_isz, max_tn)
    n_tiles = d_out_p // tn

    # Per-call work: only the activation gets padded/cast.
    xp = jnp.pad(x.astype(jnp.float32), ((0, 0), (0, d_in_p - D_in)))

    # VMEM requirement (BlockSpec double-buffers every operand).
    vmem_needed = (
        2 * B * d_in_p * 4            # resident x
        + 4 * d_in_p * 4              # gamma + beta
        + 2 * d_in_p * tn * w_isz     # streamed weight tile
        + 2 * tn * 4                  # bias tile
        + 2 * B * tn * 4              # output tile
    )
    vmem_limit = int(min(max(2 * vmem_needed, 32 << 20), 48 << 20))
    vmem_limit = max(vmem_limit, vmem_needed + (4 << 20))  # never below actual need

    cost = pl.CostEstimate(
        flops=2 * B * d_in_p * d_out_p + 8 * B * d_in_p * n_tiles,
        transcendentals=0,
        bytes_accessed=(
            4 * (B * d_in_p + B * d_out_p + 2 * d_in_p + d_out_p)
            + w_isz * d_in_p * d_out_p
        ),
    )

    out_p = pl.pallas_call(
        _decoder_kernel,
        out_shape=jax.ShapeDtypeStruct((B, d_out_p), jnp.float32),
        grid=(n_tiles,),
        in_specs=[
            pl.BlockSpec((B, d_in_p), lambda j: (0, 0)),   # x (resident)
            pl.BlockSpec((1, d_in_p), lambda j: (0, 0)),   # gamma
            pl.BlockSpec((1, d_in_p), lambda j: (0, 0)),   # beta
            pl.BlockSpec((d_in_p, tn), lambda j: (0, j)),  # weight tile (streamed)
            pl.BlockSpec((1, tn), lambda j: (0, j)),       # bias tile
        ],
        out_specs=pl.BlockSpec((B, tn), lambda j: (0, j)),
        compiler_params=pltpu.CompilerParams(
            # No cross-iteration state: axis is parallel (megacore-splittable).
            dimension_semantics=("parallel",),
            vmem_limit_bytes=vmem_limit,
        ),
        cost_estimate=cost,
    )(xp, params["gamma"], params["beta"], params["w"], params["b"])

    return out_p[:, :D_out]


def init_decoder_params(key, input_dim, output_dim):
    """Deterministic init matching nn.Linear / nn.BatchNorm1d defaults."""
    k_w, k_b = jax.random.split(key)
    bound = 1.0 / (input_dim ** 0.5)
    # PyTorch Linear: weight (out, in) ~ U(-bound, bound); store transposed.
    w = jax.random.uniform(k_w, (output_dim, input_dim), jnp.float32,
                           minval=-bound, maxval=bound)
    b = jax.random.uniform(k_b, (output_dim,), jnp.float32,
                           minval=-bound, maxval=bound)
    gamma = jnp.ones((1, input_dim), jnp.float32)   # BN weight
    beta = jnp.zeros((1, input_dim), jnp.float32)   # BN bias
    return gamma, beta, w.T, b.reshape(1, output_dim)


def decoder_reference(x, gamma, beta, w_t, b):
    """Pure-JAX reference matching the PyTorch forward (training-mode BN)."""
    mean = jnp.mean(x, axis=0, keepdims=True)
    var = jnp.mean((x - mean) ** 2, axis=0, keepdims=True)
    x_bn = (x - mean) / jnp.sqrt(var + BN_EPS) * gamma + beta
    return x_bn @ w_t + b


if __name__ == "__main__":
    key = jax.random.PRNGKey(0)
    k_x, k_p, k_x2, k_p2 = jax.random.split(key, 4)

    # Case 1: small module-default-like shapes, f32 weight path, tight check
    # against the PyTorch-equivalent reference.
    B, INPUT_DIM, OUTPUT_DIM = 8, 32, 16
    hidden = jax.random.normal(k_x, (B, INPUT_DIM), jnp.float32)
    gamma, beta, w_t, b = init_decoder_params(k_p, INPUT_DIM, OUTPUT_DIM)
    ref = decoder_reference(hidden, gamma, beta, w_t, b)

    params_f32 = prepare_decoder_params(gamma, beta, w_t, b,
                                        weight_dtype=jnp.float32)
    out = jax.block_until_ready(decoder_forward(hidden, params_f32))
    assert out.shape == (B, OUTPUT_DIM), out.shape
    assert jnp.allclose(out, ref, atol=1e-4, rtol=1e-4), "mismatch (f32 path)"

    # Case 2: default bf16 streamed-weight path (mem-bound win); f32 BN math
    # and f32 accumulation, so only input rounding -> loose tolerance.
    params_bf16 = prepare_decoder_params(gamma, beta, w_t, b)
    out_bf = jax.block_until_ready(decoder_forward(hidden, params_bf16))
    assert out_bf.shape == (B, OUTPUT_DIM), out_bf.shape
    assert jnp.allclose(out_bf, ref, atol=5e-2, rtol=5e-2), "mismatch (bf16 path)"

    # Case 3: unaligned dims; forced multi-tile grid (max_tn=128) and then the
    # adaptive single-tile path (tn = 384) on the same prepared params.
    B2, D_IN2, D_OUT2 = 8, 160, 384
    hidden2 = jax.random.normal(k_x2, (B2, D_IN2), jnp.float32)
    gamma2, beta2, w_t2, b2 = init_decoder_params(k_p2, D_IN2, D_OUT2)
    ref2 = decoder_reference(hidden2, gamma2, beta2, w_t2, b2)
    params2 = prepare_decoder_params(gamma2, beta2, w_t2, b2)

    out2 = jax.block_until_ready(decoder_forward(hidden2, params2, max_tn=128))
    assert out2.shape == (B2, D_OUT2), out2.shape
    assert jnp.allclose(out2, ref2, atol=5e-2, rtol=5e-2), "mismatch (grid path)"

    out3 = jax.block_until_ready(decoder_forward(hidden2, params2))
    assert jnp.allclose(out3, ref2, atol=5e-2, rtol=5e-2), "mismatch (single-tile path)"

    print("KERNEL_OK")
</pallas_src>

<mosaic_0001>
module attributes {stable_mosaic.version = 11 : i64} {
  func.func @_decoder_kernel(%arg0: i32, %arg1: memref<8x128xf32, #tpu.memory_space<vmem>>, %arg2: memref<1x128xf32, #tpu.memory_space<vmem>>, %arg3: memref<1x128xf32, #tpu.memory_space<vmem>>, %arg4: memref<128x128xf32, #tpu.memory_space<vmem>>, %arg5: memref<1x128xf32, #tpu.memory_space<vmem>>, %arg6: memref<8x128xf32, #tpu.memory_space<vmem>>) attributes {dimension_semantics = [#tpu.dimension_semantics<parallel>], iteration_bounds = array<i64: 1>, scalar_prefetch = 0 : i64, scratch_operands = 0 : i64, tpu.core_type = #tpu.core_type<tc>, window_params = [{pipeline_mode = #tpu.pipeline_mode<synchronous>, transform_indices = @transform_0, window_bounds = array<i64: 8, 128>}, {pipeline_mode = #tpu.pipeline_mode<synchronous>, transform_indices = @transform_1, window_bounds = array<i64: 1, 128>}, {pipeline_mode = #tpu.pipeline_mode<synchronous>, transform_indices = @transform_2, window_bounds = array<i64: 1, 128>}, {transform_indices = @transform_3, window_bounds = array<i64: 128, 128>}, {transform_indices = @transform_4, window_bounds = array<i64: 1, 128>}, {transform_indices = @transform_5, window_bounds = array<i64: 8, 128>}]} {
    %c0 = arith.constant 0 : index
    %c0_0 = arith.constant 0 : index
    %0 = vector.load %arg1[%c0, %c0_0] : memref<8x128xf32, #tpu.memory_space<vmem>>, vector<8x128xf32>
    %cst = arith.constant dense<0.000000e+00> : vector<128xf32>
    %1 = vector.multi_reduction <add>, %0, %cst [0] : vector<8x128xf32> to vector<128xf32>
    %2 = vector.shape_cast %1 : vector<128xf32> to vector<1x128xf32>
    %cst_1 = arith.constant 8.000000e+00 : f32
    %3 = vector.broadcast %cst_1 : f32 to vector<1x128xf32>
    %4 = arith.divf %2, %3 : vector<1x128xf32>
    %5 = vector.broadcast %4 : vector<1x128xf32> to vector<8x128xf32>
    %6 = arith.subf %0, %5 : vector<8x128xf32>
    %7 = arith.mulf %6, %6 : vector<8x128xf32>
    %cst_2 = arith.constant dense<0.000000e+00> : vector<128xf32>
    %8 = vector.multi_reduction <add>, %7, %cst_2 [0] : vector<8x128xf32> to vector<128xf32>
    %9 = vector.shape_cast %8 : vector<128xf32> to vector<1x128xf32>
    %cst_3 = arith.constant 8.000000e+00 : f32
    %10 = vector.broadcast %cst_3 : f32 to vector<1x128xf32>
    %11 = arith.divf %9, %10 : vector<1x128xf32>
    %cst_4 = arith.constant 9.99999974E-6 : f32
    %12 = vector.broadcast %cst_4 : f32 to vector<1x128xf32>
    %13 = arith.addf %11, %12 : vector<1x128xf32>
    %14 = math.rsqrt %13 : vector<1x128xf32>
    %c0_5 = arith.constant 0 : index
    %c0_6 = arith.constant 0 : index
    %15 = vector.load %arg2[%c0_5, %c0_6] : memref<1x128xf32, #tpu.memory_space<vmem>>, vector<1x128xf32>
    %16 = arith.mulf %15, %14 : vector<1x128xf32>
    %c0_7 = arith.constant 0 : index
    %c0_8 = arith.constant 0 : index
    %17 = vector.load %arg3[%c0_7, %c0_8] : memref<1x128xf32, #tpu.memory_space<vmem>>, vector<1x128xf32>
    %18 = arith.mulf %4, %16 : vector<1x128xf32>
    %19 = arith.subf %17, %18 : vector<1x128xf32>
    %20 = vector.broadcast %16 : vector<1x128xf32> to vector<8x128xf32>
    %21 = arith.mulf %0, %20 : vector<8x128xf32>
    %22 = vector.broadcast %19 : vector<1x128xf32> to vector<8x128xf32>
    %23 = arith.addf %21, %22 : vector<8x128xf32>
    %c0_9 = arith.constant 0 : index
    %c0_10 = arith.constant 0 : index
    %24 = vector.load %arg4[%c0_9, %c0_10] : memref<128x128xf32, #tpu.memory_space<vmem>>, vector<128x128xf32>
    %cst_11 = arith.constant dense<0.000000e+00> : vector<8x128xf32>
    %25 = tpu.matmul %23, %24, %cst_11 {dimension_numbers = #tpu.dot_dimension_numbers<[1], [0], [0], [1], [0, 0, 1, 1], [], []>} : vector<8x128xf32>, vector<128x128xf32>, vector<8x128xf32> -> vector<8x128xf32>
    %c0_12 = arith.constant 0 : index
    %c0_13 = arith.constant 0 : index
    %26 = vector.load %arg5[%c0_12, %c0_13] : memref<1x128xf32, #tpu.memory_space<vmem>>, vector<1x128xf32>
    %27 = vector.broadcast %26 : vector<1x128xf32> to vector<8x128xf32>
    %28 = arith.addf %25, %27 : vector<8x128xf32>
    %c0_14 = arith.constant 0 : index
    %c0_15 = arith.constant 0 : index
    %29 = vector.load %arg6[%c0_14, %c0_15] : memref<8x128xf32, #tpu.memory_space<vmem>>, vector<8x128xf32>
    tpu.vector_store %arg6[%c0_14, %c0_15], %28 {strides = array<i32>} : memref<8x128xf32, #tpu.memory_space<vmem>>, vector<8x128xf32>,
    return
  }
  func.func @transform_0(%arg0: i32) -> (i32, i32) {
    %c0_i32 = arith.constant 0 : i32
    %c0_i32_0 = arith.constant 0 : i32
    %c0_i32_1 = arith.constant 0 : i32
    return %c0_i32, %c0_i32_0 : i32, i32
  }
  func.func @transform_1(%arg0: i32) -> (i32, i32) {
    %c0_i32 = arith.constant 0 : i32
    %c0_i32_0 = arith.constant 0 : i32
    %c0_i32_1 = arith.constant 0 : i32
    return %c0_i32, %c0_i32_0 : i32, i32
  }
  func.func @transform_2(%arg0: i32) -> (i32, i32) {
    %c0_i32 = arith.constant 0 : i32
    %c0_i32_0 = arith.constant 0 : i32
    %c0_i32_1 = arith.constant 0 : i32
    return %c0_i32, %c0_i32_0 : i32, i32
  }
  func.func @transform_3(%arg0: i32) -> (i32, i32) {
    %c0_i32 = arith.constant 0 : i32
    %c0_i32_0 = arith.constant 0 : i32
    return %c0_i32, %arg0 : i32, i32
  }
  func.func @transform_4(%arg0: i32) -> (i32, i32) {
    %c0_i32 = arith.constant 0 : i32
    %c0_i32_0 = arith.constant 0 : i32
    return %c0_i32, %arg0 : i32, i32
  }
  func.func @transform_5(%arg0: i32) -> (i32, i32) {
    %c0_i32 = arith.constant 0 : i32
    %c0_i32_0 = arith.constant 0 : i32
    return %c0_i32, %arg0 : i32, i32
  }
}

</mosaic_0001>

<bundles_post_ra>
// kernel: tpu_custom_call.1
= control target key start
LH: loop header
LB: loop body
LE: loop exit
PB: predicated region body
PF: predicated region fallthrough
CT: control target
= control target key end

     0   :  { %10 = vsyncpa [#allocation3], 0  ;;  %s445_s0 = inlined_call_operand.hbm [shape: f32[8,128], index: 0, kind: input, shape index: {}]   ;;  %s446_s1 = inlined_call_operand.vmem [shape: f32[1,128], index: 1, kind: input, shape index: {}]   ;;  %s447_s2 = inlined_call_operand.vmem [shape: f32[1,128], index: 2, kind: input, shape index: {}]   ;;  %s448_s3 = inlined_call_operand.hbm [shape: f32[128,128], index: 3, kind: input, shape index: {}]   ;;  %s449_s4 = inlined_call_operand.vmem [shape: f32[1,128], index: 4, kind: input, shape index: {}]   ;;  %s450_s5 = inlined_call_operand.hbm [shape: f32[8,128], index: 5, kind: output, shape index: {}]  }
   0x1   :  { %11 = vsyncpa [#allocation6], 0 }
   0x2   :  { %12 = vsyncpa [#allocation4], 0  ;;  %s355_s18 = smov [#allocation2]   ;;  %s356_s20 = smov [#allocation5]  }
   0x3   :  { %s19_s19 = sshll.u32 %s355_s18, 4  ;;  %s32_s21 = sshll.u32 %s356_s20, 4  ;;  %s20_s19 = int_to_ptr.vmem [resolvable:$true] %s19_s19  ;;  %s393_s21 = int_to_ptr.vmem [resolvable:$true] %s32_s21 }
   0x4   :  { %s283_s24 = scalar_lea.hbm %s445_s0, 128 }
   0x5   :  { %p284_p0 = scmp.ne.s32.totalorder %s445_s0, %s283_s24  ;;  %p287_p1 = scmp.lt.u32.totalorder %s283_s24, %s445_s0 }
   0x7   :  { %p289_p2 = pnand %p287_p1, %p284_p0 }
   0x9   :  { %292 = shalt.err (!%p289_p2)
}
   0xa   :  { %s293_s29 = scalar_lea.vmem %s20_s19, 128  ;;  %p298_p4 = scmp.lt.s32.totalorder %s20_s19, %s20_s19 }
   0xb   :  { %p294_p3 = scmp.ne.s32.totalorder %s20_s19, %s293_s29  ;;  %p299_p5 = scmp.lt.s32.totalorder %s293_s29, %s293_s29 }
   0xd   :  { %p300_p6 = por %p299_p5, %p298_p4 }
   0xf   :  { %p301_p7 = pnand %p300_p6, %p294_p3 }
  0x11   :  { %304 = shalt.err (!%p301_p7)
}
  0x12   :  { %22 = dma.hbm_to_vmem [thread:$0]  %s445_s0, 128, %s20_s19, [#allocation3]  }
  0x13   :  { %s305_s9 = scalar_lea.hbm %s448_s3, 2048 }
  0x14   :  { %p306_p8 = scmp.ne.s32.totalorder %s448_s3, %s305_s9  ;;  %p309_p9 = scmp.lt.u32.totalorder %s305_s9, %s448_s3 }
  0x16   :  { %p311_p10 = pnand %p309_p9, %p306_p8 }
  0x18   :  { %314 = shalt.err (!%p311_p10)
}
  0x19   :  { %s315_s14 = scalar_lea.vmem %s393_s21, 2048  ;;  %p320_p12 = scmp.lt.s32.totalorder %s393_s21, %s393_s21 }
  0x1a   :  { %p316_p11 = scmp.ne.s32.totalorder %s393_s21, %s315_s14  ;;  %p321_p13 = scmp.lt.s32.totalorder %s315_s14, %s315_s14 }
  0x1c   :  { %p322_p0 = por %p321_p13, %p320_p12 }
  0x1e   :  { %p323_p1 = pnand %p322_p0, %p316_p11 }
  0x20   :  { %326 = shalt.err (!%p323_p1)
}
  0x21   :  { %s357_s0 = smov 128   ;;  %s358_s15 = smov 8  }
  0x22   :  { %38 = dma.hbm_to_vmem [thread:$0]  %s448_s3, 2048, %s393_s21, [#allocation6], %s357_s0, %s357_s0, %s358_s15  }
  0x23   :  { %349 = dma.done.wait [#allocation3], 128  }
  0x24   :  { %350 = vsyncadd [#allocation3], 4294967168 }
  0x25   :  { %351 = dma.done.wait [#allocation6], 2048  }
  0x26   :  { %352 = vsyncadd [#allocation6], 4294965248  ;;  %v359_v0 = vmov 0.0|0.0   ;;  %vm360_vm0 = vmmov 0   ;;  %v361_v1 = vmov 0.0   ;;  %v86_v2 = vld [vmem:[#allocation5] sm:$0xff]  ;;  %v73_v44 = vlaneseq }
  0x27   :  { %249 = vmatprep.subr.bf16.mxu0 %v359_v0  ;;  %246 = vmatprep.mubr.msk.f32.mxu0 %vm360_vm0, %v361_v1  ;;  %v87_v3 = vld [vmem:[#allocation5 + $0x8] sm:$0xff]  ;;  %v88_v4 = vld [vmem:[#allocation5 + $0x10] sm:$0xff]  ;;  %v89_v6 = vld [vmem:[#allocation5 + $0x18] sm:$0xff]  ;;  %s362_s23 = smov [#allocation7]  }
  0x28   :  { %v250_v5 = vpack.c.bf16 %v87_v3, %v86_v2  ;;  %v253_v7 = vpack.c.bf16 %v89_v6, %v88_v4  ;;  %v90_v8 = vld [vmem:[#allocation5 + $0x20] sm:$0xff]  ;;  %v91_v9 = vld [vmem:[#allocation5 + $0x28] sm:$0xff]  ;;  %v47_v10 = vld [vmem:[#allocation2] sm:$0xff]  ;;  %v74_v45 = vshrl.u32 %v73_v44, 7 }
  0x29   :  { %v48_v11 = vrot.slane %v47_v10, 4  ;;  %v256_v12 = vpack.c.bf16 %v91_v9, %v90_v8  ;;  %v92_v13 = vld [vmem:[#allocation5 + $0x30] sm:$0xff]  ;;  %v93_v14 = vld [vmem:[#allocation5 + $0x38] sm:$0xff]  ;;  %v94_v18 = vld [vmem:[#allocation5 + $0x40] sm:$0xff] }
  0x2a   :  { %251 = vmatpush3.bf16.msra.mxu0 %v250_v5  ;;  %v259_v17 = vpack.c.bf16 %v93_v14, %v92_v13  ;;  %v95_v19 = vld [vmem:[#allocation5 + $0x48] sm:$0xff]  ;;  %v96_v23 = vld [vmem:[#allocation5 + $0x50] sm:$0xff]  ;;  %v97_v24 = vld [vmem:[#allocation5 + $0x58] sm:$0xff]  ;;  %v75_v47 = vsub.s32 0, %v74_v45 }
  0x2b   :  { %252 = vmatprep.subr.bf16.mxu0 %v359_v0  ;;  %v49_v15 = vadd.f32 %v48_v11, %v47_v10  ;;  %v262_v22 = vpack.c.bf16 %v95_v19, %v94_v18  ;;  %v265_v27 = vpack.c.bf16 %v97_v24, %v96_v23  ;;  %v98_v28 = vld [vmem:[#allocation5 + $0x60] sm:$0xff]  ;;  %v99_v29 = vld [vmem:[#allocation5 + $0x68] sm:$0xff]  ;;  %v100_v33 = vld [vmem:[#allocation5 + $0x70] sm:$0xff] }
  0x2c   :  { %v268_v32 = vpack.c.bf16 %v99_v29, %v98_v28  ;;  %v101_v34 = vld [vmem:[#allocation5 + $0x78] sm:$0xff] }
  0x2d   :  { %v50_v16 = vrot.slane %v49_v15, 2  ;;  %v271_v37 = vpack.c.bf16 %v101_v34, %v100_v33  ;;  %v67_v46 = vld [vmem:[%s446_s1] sm:$0x1]  ;;  %s186_s1 = sshll.u32 %s362_s23, 4  ;;  %s187_s1 = int_to_ptr.vmem [resolvable:$true] %s186_s1 }
  0x2e   :  { %254 = vmatpush3.bf16.msra.mxu0 %v253_v7  ;;  %v69_v50 = vld [vmem:[%s447_s2] sm:$0x1]  ;;  %s327_s24 = scalar_lea.vmem %s187_s1, 128  ;;  %p332_p3 = scmp.lt.s32.totalorder %s187_s1, %s187_s1 }
  0x2f   :  { %255 = vmatprep.subr.bf16.mxu0 %v359_v0  ;;  %v51_v20 = vadd.f32 %v50_v16, %v49_v15  ;;  %v196_v57 = vld [vmem:[%s449_s4] ss:$0 sm:$0xff]  ;;  %p328_p2 = scmp.ne.s32.totalorder %s187_s1, %s327_s24  ;;  %p333_p4 = scmp.lt.s32.totalorder %s327_s24, %s327_s24 }
  0x31   :  { %v52_v21 = vrot.slane %v51_v20, 1  ;;  %p334_p5 = por %p333_p4, %p332_p3 }
  0x32   :  { %257 = vmatpush3.bf16.msra.mxu0 %v256_v12 }
  0x33   :  { %258 = vmatprep.subr.bf16.mxu0 %v359_v0  ;;  %v53_v25 = vadd.f32 %v52_v21, %v51_v20  ;;  %p335_p6 = pnand %p334_p5, %p328_p2 }
  0x35   :  { %v55_v26 = vmul.f32 0.125, %v53_v25 }
  0x36   :  { %260 = vmatpush3.bf16.msra.mxu0 %v259_v17 }
  0x37   :  { %261 = vmatprep.subr.bf16.mxu0 %v359_v0  ;;  %v56_v30 = vsub.f32 %v47_v10, %v55_v26 }
  0x39   :  { %v57_v31 = vmul.f32 %v56_v30, %v56_v30 }
  0x3a   :  { %263 = vmatpush3.bf16.msra.mxu0 %v262_v22 }
  0x3b   :  { %264 = vmatprep.subr.bf16.mxu0 %v359_v0  ;;  %v58_v35 = vrot.slane %v57_v31, 4 }
  0x3d   :  { %v59_v36 = vadd.f32 %v58_v35, %v57_v31 }
  0x3e   :  { %266 = vmatpush3.bf16.msra.mxu0 %v265_v27 }
  0x3f   :  { %267 = vmatprep.subr.bf16.mxu0 %v359_v0  ;;  %v60_v38 = vrot.slane %v59_v36, 2 }
  0x41   :  { %v61_v39 = vadd.f32 %v60_v38, %v59_v36 }
  0x42   :  { %269 = vmatpush3.bf16.msra.mxu0 %v268_v32 }
  0x43   :  { %270 = vmatprep.subr.bf16.mxu0 %v359_v0  ;;  %v62_v40 = vrot.slane %v61_v39, 1 }
  0x45   :  { %v63_v41 = vadd.f32 %v62_v40, %v61_v39 }
  0x46   :  { %272 = vmatpush3.bf16.msra.mxu0 %v271_v37 }
  0x47   :  { %v64_v42 = vmul.f32 0.125, %v63_v41 }
  0x49   :  { %v65_v43 = vadd.f32 1e-05, %v64_v42 }
  0x4b   :  { %281 = vrsqrt.f32 %v65_v43 }
  0x55   :  { %v282_v48 = vpop.eup %281 }
  0x56   :  { %v68_v49 = vmul.f32 %v282_v48, %v67_v46 }
  0x58   :  { %v70_v51 = vmul.f32 %v68_v49, %v55_v26  ;;  %v76_v52 = vrot.slane %v68_v49, %v75_v47 }
  0x5a   :  { %v71_v53 = vsub.f32 %v69_v50, %v70_v51  ;;  %v78_v54 = vmul.f32 %v76_v52, %v47_v10 }
  0x5c   :  { %v83_v55 = vrot.slane %v71_v53, %v75_v47 }
  0x5e   :  { %v85_v56 = vadd.f32 %v83_v55, %v78_v54 }
  0x60   :  { %247 = vmatmul.mubr.f32.vlgmr.msra.gmra.mrb[0].mxu0 %v85_v56 }
 0x133   :  { %v175_v58 = vpop.f32.mrb[0].mxu0 }
 0x134   :  { %v176_v59 = vadd.f32 %v196_v57, %v175_v58  ;;  %v248_v60 = vpop.f32.mrb[1].mxu0 }
 0x136   :  { %179 = vst [vmem:[#allocation7] sm:$0xff] %v176_v59 }
 0x137   :  { %338 = shalt.err (!%p335_p6)
}
 0x138   :  { %s339_s26 = scalar_lea.hbm %s450_s5, 128 }
 0x139   :  { %p340_p7 = scmp.ne.s32.totalorder %s450_s5, %s339_s26  ;;  %p343_p8 = scmp.lt.u32.totalorder %s339_s26, %s450_s5 }
 0x13b   :  { %p345_p9 = pnand %p343_p8, %p340_p7 }
 0x13d   :  { %348 = shalt.err (!%p345_p9)
}
 0x13e   :  { %189 = dma.vmem_to_hbm [thread:$0]  %s187_s1, 128, %s450_s5, [#allocation4]  }
 0x13f   :  { %353 = dma.done.wait [#allocation4], 128  }
 0x140   :  { %354 = vsyncadd [#allocation4], 4294967168 }
 0x141   :  { %193 = vsyncpa [#allocation3], 1 }
 0x142   :  { %194 = vsyncpa [#allocation6], 1 }
 0x143   :  { %195 = vsyncpa [#allocation4], 1 }

</bundles_post_ra>
